<compile_context>
chip_gen: v5e
topology: v5e:2x2
jax: 0.10.0
libtpu: 0.0.40
codegen_flags: <defaults>
</compile_context>

<pallas_src>
import numpy as np
import jax
import jax.numpy as jnp
from jax import lax
from jax.experimental import pallas as pl
from jax.experimental.pallas import tpu as pltpu

BACKOFF_PROB = 1e-10


# ---------------------------------------------------------------------------
# Pallas kernel: per-tile sampled-softmax loss partial sum.
# ---------------------------------------------------------------------------
def _make_ssloss_kernel(n_valid, tile_n):
    f32 = jnp.float32

    def kernel(x_ref, te_ref, qt_ref, ne_ref, qn_ref, part_ref):
        x = x_ref[...]            # (TN, D)  activations                (f32 or bf16)
        te = te_ref[...]          # (TN, D)  embs[target]               (f32 or bf16)
        qt = qt_ref[...]          # (TN, 1)  logprob_noise[target]      (f32)
        qn = qn_ref[...]          # (1, Rp)  logprob_noise[noise], pads = +1e30 (f32)

        # model score minus noise log-prob (get_score + sampled_softmax_loss)
        s_t = jnp.sum(x.astype(f32) * te.astype(f32), axis=1, keepdims=True) - qt
        s_n = lax.dot_general(x, ne_ref[...], (((1,), (1,)), ((), ())),
                              preferred_element_type=f32) - qn          # (TN, Rp)

        # cross-entropy with label 0 == logsumexp(logits) - logits[:, 0]
        m = jnp.maximum(s_t, jnp.max(s_n, axis=1, keepdims=True))       # (TN, 1)
        # TODO(synk): on v6e/v7x with small D the single EUP slot (exp) binds
        # before the MXU; a bf16 exp path would help there (not on v5e).
        lse = m + jnp.log(jnp.exp(s_t - m)
                          + jnp.sum(jnp.exp(s_n - m), axis=1, keepdims=True))

        # Ragged last tile: rows >= N contain garbage -> mask with where
        # (never multiply: 0*Inf would be NaN and poison the partial sum).
        row0 = pl.program_id(0) * tile_n
        rows = row0 + lax.broadcasted_iota(jnp.int32, (tile_n, 1), 0)
        loss = jnp.where(rows < n_valid, lse - s_t, 0.0)                # (TN, 1)

        part_ref[...] = jnp.broadcast_to(jnp.sum(loss).astype(f32), part_ref.shape)

    return kernel


def ssloss_pallas(target, x, embs, noise_idx, logprob_noise, *,
                  tile_n=None, matmul_dtype=jnp.float32):
    f32 = jnp.float32
    B, L = target.shape
    D = x.shape[-1]
    R = int(noise_idx.shape[0])
    N = B * L

    tgt = target.reshape(N).astype(jnp.int32)
    nz = noise_idx.astype(jnp.int32)
    logq = logprob_noise.astype(f32)
    embs_f = embs.astype(f32)

    # O(N*D)/O(R*D) gathers stay in XLA as plain indexing (no one-hot matmuls,
    # no (V,*) blocks in VMEM).  No padded copies of the big (N,*) arrays.
    x_in = x.reshape(N, D).astype(matmul_dtype)                 # (N, D)
    te_in = jnp.take(embs_f, tgt, axis=0).astype(matmul_dtype)  # (N, D)
    qt = jnp.take(logq, tgt, axis=0)[:, None]                   # (N, 1)
    ne = jnp.take(embs_f, nz, axis=0).astype(matmul_dtype)      # (R, D)
    qn = jnp.take(logq, nz, axis=0)                             # (R,)

    # Lane-dense noise dim: pad R to a multiple of 128 (tiny, resident block).
    # Padded columns carry q = +1e30 (f32) so their logit ~ -1e30 and exp()
    # underflows to exactly 0 in the LSE.
    Rp = max(128, ((R + 127) // 128) * 128)
    ne_p = jnp.zeros((Rp, D), matmul_dtype).at[:R].set(ne)
    qn_p = jnp.full((1, Rp), 1e30, f32).at[0, :R].set(qn)

    itemsize = jnp.dtype(matmul_dtype).itemsize
    stream_row_bytes = 2 * D * itemsize + 4            # x + te + qt per row
    resident_bytes = Rp * D * itemsize + Rp * 4        # ne + qn (single-buffered)

    # Tile the token axis: big tiles (512) when N is large; for small N keep
    # >= 2 grid steps so both v7x TensorCores get work.  Cap against a
    # conservative 32 MiB VMEM budget (v7x scoped default).
    if tile_n is None:
        if N >= 1024:
            tile_n = 512
        else:
            tile_n = max(8, ((-(-N // 2)) + 7) // 8 * 8)
    budget = 32 * 1024 * 1024
    max_tile = max(8, ((budget - 2 * resident_bytes) // (2 * stream_row_bytes)) // 8 * 8)
    tile_n = int(min(tile_n, max_tile))
    num_tiles = -(-N // tile_n)

    vmem_bytes = int(min(100 * 1024 * 1024,
                         4 * tile_n * stream_row_bytes + 2 * resident_bytes + (4 << 20)))

    cost = pl.CostEstimate(
        flops=2 * N * D * Rp + 4 * N * D + 6 * N * Rp,
        transcendentals=N * (Rp + 2),
        bytes_accessed=N * stream_row_bytes + resident_bytes + num_tiles * 128 * 4,
    )

    parts = pl.pallas_call(
        _make_ssloss_kernel(N, tile_n),
        out_shape=jax.ShapeDtypeStruct((num_tiles, 1, 128), f32),
        grid=(num_tiles,),
        in_specs=[
            pl.BlockSpec((tile_n, D), lambda i: (i, 0)),   # x tile (streamed)
            pl.BlockSpec((tile_n, D), lambda i: (i, 0)),   # embs[target] tile (streamed)
            pl.BlockSpec((tile_n, 1), lambda i: (i, 0)),   # logq[target] tile (streamed)
            pl.BlockSpec((Rp, D), lambda i: (0, 0),
                         pipeline_mode=pl.Buffered(buffer_count=1)),   # noise embs (resident)
            pl.BlockSpec((1, Rp), lambda i: (0, 0),
                         pipeline_mode=pl.Buffered(buffer_count=1)),   # noise logq (resident)
        ],
        out_specs=pl.BlockSpec((1, 1, 128), lambda i: (i, 0, 0)),
        compiler_params=pltpu.CompilerParams(
            dimension_semantics=("parallel",),
            vmem_limit_bytes=vmem_bytes),
        cost_estimate=cost,
    )(x_in, te_in, qt, ne_p, qn_p)

    # Tiny final reduce over num_tiles partials; mean over the true N rows.
    return parts[:, 0, 0].sum() / N


# ---------------------------------------------------------------------------
# Glue: AliasMultinomial table construction + draw (deterministic in-script).
# TODO(synk): alias-table build / multinomial draw are host-side control flow
# (no Pallas equivalent); kept in numpy / plain JAX.
# ---------------------------------------------------------------------------
def build_alias_table(probs_np):
    K = probs_np.shape[0]
    prob = (K * probs_np).astype(np.float64).copy()
    alias = np.zeros(K, dtype=np.int64)
    smaller = [i for i in range(K) if prob[i] < 1.0]
    larger = [i for i in range(K) if prob[i] >= 1.0]
    while smaller and larger:
        small = smaller.pop()
        large = larger.pop()
        alias[small] = large
        prob[large] = prob[large] - 1.0 + prob[small]
        (smaller if prob[large] < 1.0 else larger).append(large)
    for last in smaller + larger:
        prob[last] = 1.0
    return prob, alias


def alias_draw(key, prob, alias, n):
    K = prob.shape[0]
    k1, k2 = jax.random.split(key)
    kk = jax.random.randint(k1, (n,), 0, K)
    p = jnp.asarray(prob, jnp.float32)[kk]
    a = jnp.asarray(alias, jnp.int32)[kk]
    b = jax.random.bernoulli(k2, p).astype(jnp.int32)
    return kk * b + a * (1 - b)


def ssloss_reference(target, x, embs, noise_idx, logprob_noise):
    """Pure-JAX reference mirroring the PyTorch forward (for verification)."""
    D = x.shape[-1]
    xf = x.reshape(-1, D)
    tflat = target.reshape(-1)
    te = embs[tflat]
    s_t = jnp.sum(xf * te, axis=1) - logprob_noise[tflat]
    ne = embs[noise_idx]
    s_n = xf @ ne.T - logprob_noise[noise_idx][None, :]
    logits = jnp.concatenate([s_t[:, None], s_n], axis=1)
    loss = jax.scipy.special.logsumexp(logits, axis=1) - logits[:, 0]
    return loss.mean()


if __name__ == "__main__":
    B, L, D = 2, 8, 32        # batch, seq, hidden
    V = 32                    # vocab (rows of embs)
    R = 8                     # noise_ratio

    key = jax.random.PRNGKey(0)
    k_noise, k_tgt, k_x, k_emb, k_draw = jax.random.split(key, 5)

    # noise distribution buffer (update_noise)
    noise_counts = jax.random.uniform(k_noise, (V,), jnp.float32, 0.1, 1.0)
    probs = noise_counts / noise_counts.sum()
    probs = jnp.maximum(probs, BACKOFF_PROB)          # clamp(min=BACKOFF_PROB)
    probs = probs / probs.sum()
    logprob_noise = jnp.log(probs)

    # alias table + shared noise samples (get_noise: drawn once, expanded)
    prob_tab, alias_tab = build_alias_table(np.asarray(probs))
    noise_idx = alias_draw(k_draw, prob_tab, alias_tab, R)          # (R,)

    # forward inputs
    target = jax.random.randint(k_tgt, (B, L), 0, V)                # (B, L)
    x = jax.random.normal(k_x, (B, L, D), jnp.float32) * 0.5        # (B, L, D)
    embs = jax.random.normal(k_emb, (V, D), jnp.float32) * 0.5      # (V, D)

    out = ssloss_pallas(target, x, embs, noise_idx, logprob_noise)
    out = jax.block_until_ready(out)

    ref = ssloss_reference(target, x, embs, noise_idx, logprob_noise)
    assert np.allclose(np.asarray(out), np.asarray(ref), rtol=1e-4, atol=1e-4), (
        out, ref)

    print("KERNEL_OK")
</pallas_src>

<mosaic_0001>
module attributes {stable_mosaic.version = 11 : i64} {
  func.func @kernel(%arg0: i32, %arg1: memref<8x32xf32, #tpu.memory_space<vmem>>, %arg2: memref<8x32xf32, #tpu.memory_space<vmem>>, %arg3: memref<8x1xf32, #tpu.memory_space<vmem>>, %arg4: memref<128x32xf32, #tpu.memory_space<vmem>>, %arg5: memref<1x128xf32, #tpu.memory_space<vmem>>, %arg6: memref<1x1x128xf32, #tpu.memory_space<vmem>>) attributes {dimension_semantics = [#tpu.dimension_semantics<parallel>], iteration_bounds = array<i64: 2>, scalar_prefetch = 0 : i64, scratch_operands = 0 : i64, tpu.core_type = #tpu.core_type<tc>, window_params = [{transform_indices = @transform_0, window_bounds = array<i64: 8, 32>}, {transform_indices = @transform_1, window_bounds = array<i64: 8, 32>}, {transform_indices = @transform_2, window_bounds = array<i64: 8, 1>}, {pipeline_mode = #tpu.pipeline_mode<synchronous>, transform_indices = @transform_3, window_bounds = array<i64: 128, 32>}, {pipeline_mode = #tpu.pipeline_mode<synchronous>, transform_indices = @transform_4, window_bounds = array<i64: 1, 128>}, {transform_indices = @transform_5, window_bounds = array<i64: 1, 1, 128>}]} {
    %c0 = arith.constant 0 : index
    %c0_0 = arith.constant 0 : index
    %0 = vector.load %arg1[%c0, %c0_0] : memref<8x32xf32, #tpu.memory_space<vmem>>, vector<8x32xf32>
    %c0_1 = arith.constant 0 : index
    %c0_2 = arith.constant 0 : index
    %1 = vector.load %arg2[%c0_1, %c0_2] : memref<8x32xf32, #tpu.memory_space<vmem>>, vector<8x32xf32>
    %c0_3 = arith.constant 0 : index
    %c0_4 = arith.constant 0 : index
    %2 = vector.load %arg3[%c0_3, %c0_4] : memref<8x1xf32, #tpu.memory_space<vmem>>, vector<8x1xf32>
    %c0_5 = arith.constant 0 : index
    %c0_6 = arith.constant 0 : index
    %3 = vector.load %arg5[%c0_5, %c0_6] : memref<1x128xf32, #tpu.memory_space<vmem>>, vector<1x128xf32>
    %4 = arith.mulf %0, %1 : vector<8x32xf32>
    %cst = arith.constant dense<0.000000e+00> : vector<8xf32>
    %5 = vector.multi_reduction <add>, %4, %cst [1] : vector<8x32xf32> to vector<8xf32>
    %6 = vector.shape_cast %5 : vector<8xf32> to vector<8x1xf32>
    %7 = arith.subf %6, %2 : vector<8x1xf32>
    %c0_7 = arith.constant 0 : index
    %c0_8 = arith.constant 0 : index
    %8 = vector.load %arg4[%c0_7, %c0_8] : memref<128x32xf32, #tpu.memory_space<vmem>>, vector<128x32xf32>
    %cst_9 = arith.constant dense<0.000000e+00> : vector<8x128xf32>
    %9 = tpu.matmul %0, %8, %cst_9 {dimension_numbers = #tpu.dot_dimension_numbers<[1], [1], [0], [0], [0, 0, 1, 0], [], []>} : vector<8x32xf32>, vector<128x32xf32>, vector<8x128xf32> -> vector<8x128xf32>
    %10 = vector.broadcast %3 : vector<1x128xf32> to vector<8x128xf32>
    %11 = arith.subf %9, %10 : vector<8x128xf32>
    %cst_10 = arith.constant dense<0xFF800000> : vector<8xf32>
    %12 = vector.multi_reduction <maximumf>, %11, %cst_10 [1] : vector<8x128xf32> to vector<8xf32>
    %13 = vector.shape_cast %12 : vector<8xf32> to vector<8x1xf32>
    %14 = arith.maximumf %7, %13 : vector<8x1xf32>
    %15 = arith.subf %7, %14 : vector<8x1xf32>
    %16 = math.exp %15 : vector<8x1xf32>
    %17 = vector.broadcast %14 : vector<8x1xf32> to vector<8x128xf32>
    %18 = arith.subf %11, %17 : vector<8x128xf32>
    %19 = math.exp %18 : vector<8x128xf32>
    %cst_11 = arith.constant dense<0.000000e+00> : vector<8xf32>
    %20 = vector.multi_reduction <add>, %19, %cst_11 [1] : vector<8x128xf32> to vector<8xf32>
    %21 = vector.shape_cast %20 : vector<8xf32> to vector<8x1xf32>
    %22 = arith.addf %16, %21 : vector<8x1xf32>
    %23 = math.log %22 : vector<8x1xf32>
    %24 = arith.addf %14, %23 : vector<8x1xf32>
    %c8_i32 = arith.constant 8 : i32
    %25 = arith.muli %arg0, %c8_i32 : i32
    %26 = tpu.iota {dimensions = array<i32: 0>} : vector<8x1xi32>
    %27 = vector.broadcast %25 : i32 to vector<8x1xi32>
    %28 = arith.addi %27, %26 : vector<8x1xi32>
    %c16_i32 = arith.constant 16 : i32
    %29 = vector.broadcast %c16_i32 : i32 to vector<8x1xi32>
    %30 = arith.cmpi slt, %28, %29 : vector<8x1xi32>
    %31 = arith.subf %24, %7 : vector<8x1xf32>
    %cst_12 = arith.constant 0.000000e+00 : f32
    %32 = vector.broadcast %cst_12 : f32 to vector<8x1xf32>
    %33 = arith.select %30, %31, %32 : vector<8x1xi1>, vector<8x1xf32>
    %34 = vector.shape_cast %33 : vector<8x1xf32> to vector<1x8x1xf32>
    %cst_13 = arith.constant dense<0.000000e+00> : vector<1xf32>
    %35 = vector.multi_reduction <add>, %34, %cst_13 [1, 2] : vector<1x8x1xf32> to vector<1xf32>
    %36 = vector.shape_cast %35 : vector<1xf32> to vector<1x1x1xf32>
    %37 = vector.extract %36[0, 0, 0] : f32 from vector<1x1x1xf32>
    %38 = vector.broadcast %37 : f32 to vector<1x1x128xf32>
    %c0_14 = arith.constant 0 : index
    %c0_15 = arith.constant 0 : index
    %c0_16 = arith.constant 0 : index
    %39 = vector.load %arg6[%c0_14, %c0_15, %c0_16] : memref<1x1x128xf32, #tpu.memory_space<vmem>>, vector<1x1x128xf32>
    tpu.vector_store %arg6[%c0_14, %c0_15, %c0_16], %38 {strides = array<i32>} : memref<1x1x128xf32, #tpu.memory_space<vmem>>, vector<1x1x128xf32>,
    return
  }
  func.func @transform_0(%arg0: i32) -> (i32, i32) {
    %c0_i32 = arith.constant 0 : i32
    %c0_i32_0 = arith.constant 0 : i32
    return %arg0, %c0_i32 : i32, i32
  }
  func.func @transform_1(%arg0: i32) -> (i32, i32) {
    %c0_i32 = arith.constant 0 : i32
    %c0_i32_0 = arith.constant 0 : i32
    return %arg0, %c0_i32 : i32, i32
  }
  func.func @transform_2(%arg0: i32) -> (i32, i32) {
    %c0_i32 = arith.constant 0 : i32
    %c0_i32_0 = arith.constant 0 : i32
    return %arg0, %c0_i32 : i32, i32
  }
  func.func @transform_3(%arg0: i32) -> (i32, i32) {
    %c0_i32 = arith.constant 0 : i32
    %c0_i32_0 = arith.constant 0 : i32
    %c0_i32_1 = arith.constant 0 : i32
    return %c0_i32, %c0_i32_0 : i32, i32
  }
  func.func @transform_4(%arg0: i32) -> (i32, i32) {
    %c0_i32 = arith.constant 0 : i32
    %c0_i32_0 = arith.constant 0 : i32
    %c0_i32_1 = arith.constant 0 : i32
    return %c0_i32, %c0_i32_0 : i32, i32
  }
  func.func @transform_5(%arg0: i32) -> (i32, i32, i32) {
    %c0_i32 = arith.constant 0 : i32
    %c0_i32_0 = arith.constant 0 : i32
    %c0_i32_1 = arith.constant 0 : i32
    return %arg0, %c0_i32, %c0_i32_0 : i32, i32, i32
  }
}

</mosaic_0001>

<bundles_post_ra>
// kernel: tpu_custom_call.1
= control target key start
LH: loop header
LB: loop body
LE: loop exit
PB: predicated region body
PF: predicated region fallthrough
CT: control target
= control target key end

     0   :  { %10 = vsyncpa [#allocation3], 0  ;;  %s826_s0 = inlined_call_operand.vmem [shape: f32[16,32], index: 0, kind: input, shape index: {}]   ;;  %s827_s1 = inlined_call_operand.vmem [shape: f32[16,32], index: 1, kind: input, shape index: {}]   ;;  %s828_s2 = inlined_call_operand.vmem [shape: f32[16,1], index: 2, kind: input, shape index: {}]   ;;  %s829_s3 = inlined_call_operand.vmem [shape: f32[128,32], index: 3, kind: input, shape index: {}]   ;;  %s830_s4 = inlined_call_operand.vmem [shape: f32[1,128], index: 4, kind: input, shape index: {}]   ;;  %s831_s5 = inlined_call_operand.hbm [shape: f32[2,1,128], index: 5, kind: output, shape index: {}]  }
   0x1   :  { %12 = vsyncpa [#allocation3 + $0x1], 0  ;;  %s660_s18 = smov 0   ;;  %s662_s19 = smov 0  }
   0x2   :  { %s664_s20 = smov 0   ;;  %s666_s21 = smov 0  }
   0x3 LB: > { %s681_s22 = sadd.s32 4294967295, %s627_s21   ;;  %s487_s23 = sadd.s32 4294967294, %s627_s21   ;;  %s627_s21 = sphi %s666_s21, %s837_s21   ;;  %s623_s20 = sphi %s664_s20, %s836_s20   ;;  %s619_s19 = sphi %s662_s19, %s835_s19   ;;  %s615_s18 = sphi %s660_s18, %s834_s18  }
   0x4   : > { %s685_s24 = sadd.s32 1, %s627_s21   ;;  %s145_s25 = sadd.s32 1, %s623_s20 }
   0x5   : > { %s142_s26 = ssub.s32 %s627_s21, %s685_s24  ;;  %p155_p0 = scmp.ne.s32.totalorder %s623_s20, %s619_s19 }
   0x6   : > { %p143_p1 = scmp.eq.s32.totalorder %s142_s26, 0  ;;  %p156_p2 = scmp.eq.s32.totalorder %s681_s22, 1 }
   0x7   : > { %p161_p3 = scmp.ne.s32.totalorder %s619_s19, %s615_s18  ;;  %p162_p4 = scmp.eq.s32.totalorder %s487_s23, 1 }
   0x8   : > { %s696_s27 = scalar_select %p143_p1, %s623_s20, %s145_s25  }
   0x9   : > { %p698_p5 = por %p156_p2, %p155_p0  ;;  %p702_p6 = por %p162_p4, %p161_p3 }
   0xa   : > { %p490_p7 = scmp.ge.s32.totalorder %s627_s21, 1  ;;  %p207_p8 = scmp.lt.s32.totalorder %s627_s21, 3 }
   0xc   : > { %p208_p9 = pnand %p490_p7, %p207_p8 }
   0xd   : > { %p241_p10 = scmp.lt.s32.totalorder (!%p208_p9), %s681_s22, 1  ;;  %s404_s7 = scalar_lea.hbm (!%p208_p9), %s831_s5, %s681_s22 }
   0xe   : > { %211 = sbr.rel (%p208_p9) target bundleno = 770 (0x302), region = 40  ;;  %s408_s10 = sshll.u32 (!%p208_p9), %s404_s7, 4  ;;  %s409_s10 = int_to_ptr.hbm [resolvable:$true] %s408_s10 }
   0xf   : > { %s579_s13 = sshra.s32 (!%p208_p9), %s409_s10, 4  ;;  %s580_s13 = int_to_ptr.hbm [resolvable:$true] %s579_s13 }
  0x10   : > { %s581_s14 = scalar_lea.hbm (!%p208_p9), %s580_s13, 1  ;;  %p586_p0 = scmp.lt.s32.totalorder (!%p208_p9), %s580_s13, %s831_s5 }
  0x11   : > { %p582_p11 = scmp.ne.s32.totalorder (!%p208_p9), %s580_s13, %s581_s14 }
  0x13   : > { %vm258_vm0 = vcmask 261120   ;;  %v278_v0 = vld [vmem:[%s829_s3 + $0x78] sm:$0xff]  ;;  %v277_v1 = vld [vmem:[%s829_s3 + $0x70] sm:$0xff]  ;;  %v276_v2 = vld [vmem:[%s829_s3 + $0x68] sm:$0xff]  ;;  %s242_s25 = scalar_select %p241_p10, %s681_s22, 1  ;;  %v629_v23 = vmov 0   ;;  %v375_v38 = vlaneseq }
  0x14   : > { %494 = vmatpush.xpose.msk.msra.mxu0 %vm258_vm0, %v278_v0  ;;  %v275_v3 = vld [vmem:[%s829_s3 + $0x60] sm:$0xff]  ;;  %v274_v4 = vld [vmem:[%s829_s3 + $0x58] sm:$0xff]  ;;  %v273_v5 = vld [vmem:[%s829_s3 + $0x50] sm:$0xff]  ;;  %556 = vset.pattern.permute.xlu1 %v629_v23  ;;  %vm382_vm2 = vcmask 7168   ;;  %p583_p12 = pnand %p582_p11, %p698_p5 }
  0x15   : > { %v272_v6 = vld [vmem:[%s829_s3 + $0x48] sm:$0xff]  ;;  %v271_v7 = vld [vmem:[%s829_s3 + $0x40] sm:$0xff]  ;;  %s741_s6 = sshll.u32 %s242_s25, 3  ;;  %v270_v8 = vld [vmem:[%s829_s3 + $0x38] sm:$0xff]  ;;  %557 = vset.pattern.permute.xlu0 %v629_v23  ;;  %v376_v39 = vshrl.u32 %v375_v38, 7  ;;  %s239_s25 = sand.u32 1, %s619_s19  }
  0x16   : > { %s244_s9 = scalar_lea.vmem %s826_s0, %s741_s6  ;;  %s248_s12 = scalar_lea.vmem %s827_s1, %s741_s6  ;;  %v269_v12 = vld [vmem:[%s829_s3 + $0x30] sm:$0xff]  ;;  %v268_v14 = vld [vmem:[%s829_s3 + $0x28] sm:$0xff]  ;;  %v267_v15 = vld [vmem:[%s829_s3 + $0x20] sm:$0xff] }
  0x17   : > { %v253_v9 = vld [vmem:[%s244_s9] sm:$0xff]  ;;  %v266_v16 = vld [vmem:[%s829_s3 + $0x18] sm:$0xff]  ;;  %v265_v17 = vld [vmem:[%s829_s3 + $0x10] sm:$0xff]  ;;  %s252_s23 = scalar_lea.vmem %s828_s2, %s741_s6  ;;  %s511_s6 = sshll.u32 %s681_s22, 3 }
  0x18   : > { %495 = vmatpush.xpose.msk.msra.mxu0 %vm258_vm0, %v277_v1  ;;  %v254_v10 = vld [vmem:[%s248_s12] sm:$0xff]  ;;  %v264_v18 = vld [vmem:[%s829_s3 + $0x8] sm:$0xff]  ;;  %v377_v40 = vstv %s511_s6  ;;  %s240_s8 = scalar_lea.vmem [#allocation2], %s239_s25  ;;  %s396_s12 = scalar_lea.sflag [#allocation3], %s239_s25 }
  0x19   : > { %v257_v11 = vmul.f32 %v254_v10, %v253_v9  ;;  %v263_v19 = vld [vmem:[%s829_s3] sm:$0xff]  ;;  %v378_v42 = vadd.s32 %v377_v40, %v376_v39  ;;  %s406_s9 = sshll.u32 %s240_s8, 4  ;;  %p584_p13 = pneg %p583_p12  ;;  %s407_s9 = int_to_ptr.vmem [resolvable:$true] %s406_s9 }
  0x1a   : > { %v558_v20 = vld [vmem:[%s830_s4] ss:$0 sm:$0xff]  ;;  %s585_s22 = scalar_lea.hbm %s831_s5, 2 }
  0x1b   : > { %v259_v13 = vsel %vm258_vm0, %v257_v11, 0.0  ;;  %v255_v25 = vld [vmem:[%s252_s23] sm:$0xff]  ;;  %vm379_vm1 = vcmp.lt.s32.totalorder %v378_v42, 16  ;;  %p587_p1 = scmp.lt.s32.totalorder %s585_s22, %s581_s14 }
  0x1c   : > { %496 = vmatpush.xpose.msk.msra.mxu0 %vm258_vm0, %v276_v2  ;;  %260 = vadd.xlane.f32.xlu0 %v259_v13 }
  0x1d   : > { %p588_p2 = por %p587_p1, %p586_p0 }
  0x1f   : > { %p589_p3 = pnand %p588_p2, %p584_p13 }
  0x20   : > { %497 = vmatpush.xpose.msk.msra.mxu0 %vm258_vm0, %v275_v3 }
  0x24   : > { %498 = vmatpush.xpose.msk.msra.mxu0 %vm258_vm0, %v274_v4 }
  0x28   : > { %499 = vmatpush.xpose.msk.msra.mxu0 %vm258_vm0, %v273_v5 }
  0x2c   : > { %500 = vmatpush.xpose.msk.msra.mxu0 %vm258_vm0, %v272_v6 }
  0x30   : > { %501 = vmatpush.xpose.msk.msra.mxu0 %vm258_vm0, %v271_v7 }
  0x34   : > { %502 = vmatpush.xpose.msk.msra.mxu0 %vm258_vm0, %v270_v8 }
  0x38   : > { %503 = vmatpush.xpose.msk.msra.mxu0 %vm258_vm0, %v269_v12 }
  0x3c   : > { %504 = vmatpush.xpose.msk.msra.mxu0 %vm258_vm0, %v268_v14 }
  0x40   : > { %505 = vmatpush.xpose.msk.msra.mxu0 %vm258_vm0, %v267_v15 }
  0x44   : > { %506 = vmatpush.xpose.msk.msra.mxu0 %vm258_vm0, %v266_v16 }
  0x48   : > { %507 = vmatpush.xpose.msk.msra.mxu0 %vm258_vm0, %v265_v17 }
  0x4c   : > { %508 = vmatpush.xpose.msk.msra.mxu0 %vm258_vm0, %v264_v18 }
  0x50   : > { %509 = vmatpush.xpose.msk.msra.mxu0 %vm258_vm0, %v263_v19 }
  0x53   : > { %510 = vmatmul.msk.f32.vlgmr.msra.gmra.mxu0 %vm258_vm0, %v253_v9 }
  0x8f   : > { %v261_v24 = vpop.xlane.xlu0 %260 }
  0x90   : > { %v262_v26 = vsub.f32 %v261_v24, %v255_v25 }
  0xd0   : > { %v347_v21 = vpop.f32.mrf.mxu0 }
  0xd1   : > { %v353_v22 = vsub.f32 %v347_v21, %v558_v20 }
  0xd3   : > { %354 = vmax.xlane.f32.xlu0 %v353_v22 }
 0x146   : > { %v355_v27 = vpop.xlane.xlu0 %354 }
 0x147   : > { %v356_v28 = vmax.f32 %v262_v26, %v355_v27 }
 0x149   : > { %362 = vperm.xlu1 %556, %v356_v28   ;;  %v357_v33 = vsub.f32 %v262_v26, %v356_v28 }
 0x14b   : > { %v358_v34 = vmul.f32 1.442695, %v357_v33 }
 0x1bb   : > { %v363_v29 = vpop.permute.xlu1 %362 }
 0x1bc   : > { %v365_v30 = vsub.f32 %v353_v22, %v363_v29 }
 0x1be   : > { %v366_v31 = vmul.f32 1.442695, %v365_v30 }
 0x1c0   : > { %559 = vpow2.f32 %v366_v31 }
 0x1c1   : > { %561 = vpow2.f32 %v358_v34 }
 0x1c6   : > { %v560_v32 = vpop.eup %559 }
 0x1c7   : > { %368 = vadd.xlane.f32.xlu1 %v560_v32  ;;  %v562_v35 = vpop.eup %561 }
 0x23a   : > { %v369_v36 = vpop.xlane.xlu1 %368 }
 0x23b   : > { %v370_v37 = vadd.f32 %v562_v35, %v369_v36 }
 0x23d   : > { %563 = vlog2.f32 %v370_v37 }
 0x243   : > { %v564_v41 = vpop.eup %563 }
 0x244   : > { %v372_v43 = vmul.f32 0.6931472, %v564_v41 }
 0x246   : > { %v373_v44 = vadd.f32 %v372_v43, %v356_v28 }
 0x248   : > { %v380_v45 = vsub.f32 %v373_v44, %v262_v26 }
 0x24a   : > { %v381_v46 = vsel %vm379_vm1, %v380_v45, 0.0 }
 0x24b   : > { %v383_v47 = vsel %vm382_vm2, %v381_v46, 0.0 }
 0x24c   : > { %384 = vadd.xlane.f32.xlu2 %v383_v47 }
 0x2bf   : > { %v385_v48 = vpop.xlane.xlu2 %384 }
 0x2c0   : > { %v386_v49 = vrot.slane %v385_v48, 4 }
 0x2c2   : > { %v387_v50 = vadd.f32 %v386_v49, %v385_v48 }
 0x2c4   : > { %v388_v51 = vrot.slane %v387_v50, 2 }
 0x2c6   : > { %v389_v52 = vadd.f32 %v388_v51, %v387_v50 }
 0x2c8   : > { %v390_v53 = vrot.slane %v389_v52, 1 }
 0x2ca   : > { %v391_v54 = vadd.f32 %v390_v53, %v389_v52 }
 0x2cc   : > { %514 = vpush %v391_v54 }
 0x2fd   : > { %s515_s11 = spop %514 }
 0x2fe   : > { %v393_v55 = vstv %s515_s11 }
 0x2ff   : > { %394 = vst [vmem:[%s240_s8] sm:$0x1] %v393_v55 }
 0x300   : > { %592 = shalt.err (!%p589_p3)
}
 0x301   : > { %516 = dma.vmem_to_hbm [thread:$0]  (%p698_p5), %s407_s9, 16, %s409_s10, %s396_s12  }
 0x302 PF: > { %p522_p4 = scmp.ge.s32.totalorder %s627_s21, 2  ;;  %s420_s6 = sand.u32 1, %s615_s18  }
 0x303   : > { %s421_s25 = scalar_lea.sflag [#allocation3], %s420_s6 }
 0x304   : > { %p519_p7 = pnand %p522_p4, %p702_p6 }
 0x306   : > { %p520_p8 = pneg %p519_p7 }
 0x308   : > { %610 = dma.done.wait (%p520_p8), %s421_s25, 16  }
 0x309   : > { %612 = vsyncadd (%p520_p8), %s421_s25, 4294967280  ;;  %p15_p9 = scmp.ge.s32.totalorder %s685_s24, 4   ;;  %s834_s18 = smov %s619_s19 }
 0x30a   : > { %s835_s19 = smov %s623_s20  ;;  %s836_s20 = smov %s696_s27 }
 0x30b   : > { %s837_s21 = smov %s685_s24  ;;  %17 = sbr.rel (!%p15_p9) target bundleno = 3 (0x3), region = 81 }
 0x310   :  { %426 = vsyncpa [#allocation3], 1 }
 0x311   :  { %428 = vsyncpa [#allocation3 + $0x1], 1 }

</bundles_post_ra>
